<compile_context>
chip_gen: v5e
topology: v5e:2x2
jax: 0.10.0
libtpu: 0.0.40
codegen_flags: <defaults>
</compile_context>

<pallas_src>
import functools

import jax
import jax.numpy as jnp
from jax import lax
from jax.experimental import pallas as pl
from jax.experimental.pallas import tpu as pltpu


def _round_up(a, m):
    return (a + m - 1) // m * m


def _splade_agg_kernel(x_ref, w_ref, b_ref, m_ref, o_ref, *, s_chunk, n_chunks):
    # x_ref: (b_tile, S_pad, H)   compute dtype (bf16 by default), resident across v
    # w_ref: (H, tile_v)          compute dtype
    # b_ref: (1, tile_v)          f32
    # m_ref: (b_tile, S_pad, 1)   f32 (0/1), resident across v
    # o_ref: (b_tile, tile_v)     f32
    bt, _, h = x_ref.shape
    tv = o_ref.shape[1]
    bias = b_ref[...]  # (1, tile_v) f32, hoisted out of the loop

    def body(i, acc):
        start = pl.multiple_of(i * s_chunk, s_chunk)
        # Big-M matmul on the MXU: (b_tile*s_chunk, H) @ (H, tile_v), f32 acc.
        x = x_ref[:, pl.ds(start, s_chunk), :].reshape(bt * s_chunk, h)
        logits = jnp.dot(x, w_ref[...], preferred_element_type=jnp.float32)
        logits = logits + bias
        # relu + mask in f32, then per-batch max over this sequence chunk.
        vals = jnp.maximum(logits, 0.0).reshape(bt, s_chunk, tv)
        vals = vals * m_ref[:, pl.ds(start, s_chunk), :]
        return jnp.maximum(acc, jnp.max(vals, axis=1))

    # relu(.)*mask >= 0, so 0 is both the identity of the running max and the
    # correct value (log1p(0) = 0) for fully-masked rows.
    acc = lax.fori_loop(0, n_chunks, body, jnp.zeros((bt, tv), jnp.float32),
                        unroll=(n_chunks <= 8))

    # log1p applied once per output element (hoisted past the reduction).
    o_ref[...] = jnp.log1p(acc).astype(o_ref.dtype)


@functools.partial(
    jax.jit,
    static_argnames=("tile_v", "tile_s", "b_tile", "compute_dtype",
                     "vmem_limit_bytes"))
def splade_aggregation(x, weight, bias, mask, *, tile_v=1024, tile_s=128,
                       b_tile=16, compute_dtype=jnp.bfloat16,
                       vmem_limit_bytes=48 * 1024 * 1024):
    """SPLADE max aggregation of a linear vocab head.

    x:      [B, S, H]  token representations
    weight: [V, H]     nn.Linear(H, V).weight (PyTorch layout)
    bias:   [V]        nn.Linear(H, V).bias
    mask:   [B, S]     attention mask (0/1)
    returns [B, V] f32:  max_s log1p(relu(x @ W^T + b) * mask)
    """
    B, S, H = x.shape
    V, H2 = weight.shape
    assert H2 == H and bias.shape == (V,) and mask.shape == (B, S)

    # --- tile sizing ---------------------------------------------------------
    # vocab tile: lane-dense, multiple of 256 for the MXU when V is large.
    tile_v = min(_round_up(tile_v, 256), _round_up(V, 128))
    V_pad = _round_up(V, tile_v)

    # in-kernel sequence chunk: multiple of 16 (bf16 packs 2 rows per sublane).
    s_chunk = min(_round_up(tile_s, 16), _round_up(S, 16))
    S_pad = _round_up(S, s_chunk)
    n_chunks = S_pad // s_chunk

    # batch tile: no padding waste for small batches; otherwise the multiple
    # of 8 (output-block sublane constraint) that minimizes B_pad - B.
    if B <= b_tile:
        b_tile = B
    else:
        cands = list(range(8, _round_up(b_tile, 8) + 1, 8))
        b_tile = min(cands, key=lambda c: (_round_up(B, c) - B, -c))
    B_pad = _round_up(B, b_tile)

    # --- pad + cast (zero padding is neutral: relu(.)*mask -> 0, sliced off) --
    x_p = jnp.pad(x.astype(compute_dtype),
                  ((0, B_pad - B), (0, S_pad - S), (0, 0)))
    w_p = jnp.pad(weight.T.astype(compute_dtype), ((0, 0), (0, V_pad - V)))
    b_p = jnp.pad(bias.astype(jnp.float32), (0, V_pad - V)).reshape(1, V_pad)
    m_p = jnp.pad(mask.astype(jnp.float32),
                  ((0, B_pad - B), (0, S_pad - S))).reshape(B_pad, S_pad, 1)

    # Grid: batch tiles outer, vocab tiles inner.  x / mask block indices are
    # constant across the inner v axis, so the pipeliner DMAs them once per
    # batch tile; W^T / bias stream across v.
    grid = (B_pad // b_tile, V_pad // tile_v)

    kernel = functools.partial(_splade_agg_kernel,
                               s_chunk=s_chunk, n_chunks=n_chunks)

    out = pl.pallas_call(
        kernel,
        out_shape=jax.ShapeDtypeStruct((B_pad, V_pad), jnp.float32),
        grid_spec=pltpu.PrefetchScalarGridSpec(
            num_scalar_prefetch=0,
            grid=grid,
            in_specs=[
                pl.BlockSpec((b_tile, S_pad, H), lambda b, v: (b, 0, 0)),   # x
                pl.BlockSpec((H, tile_v), lambda b, v: (0, v)),             # W^T
                pl.BlockSpec((1, tile_v), lambda b, v: (0, v)),             # bias
                pl.BlockSpec((b_tile, S_pad, 1), lambda b, v: (b, 0, 0)),   # mask
            ],
            out_specs=pl.BlockSpec((b_tile, tile_v), lambda b, v: (b, v)),
        ),
        compiler_params=pltpu.CompilerParams(
            dimension_semantics=("parallel", "parallel"),
            vmem_limit_bytes=vmem_limit_bytes),
    )(x_p, w_p, b_p, m_p)

    return out[:B, :V]


def _reference(x, weight, bias, mask, compute_dtype=jnp.bfloat16):
    """Pure-JAX reference: log1p(relu(x @ W^T + b) * mask).max(seq)."""
    logits = jnp.einsum("bsh,vh->bsv", x.astype(compute_dtype),
                        weight.astype(compute_dtype),
                        preferred_element_type=jnp.float32)
    logits = logits + bias[None, None, :].astype(jnp.float32)
    vals = jnp.maximum(logits, 0.0) * mask[..., None].astype(jnp.float32)
    return jnp.log1p(jnp.max(vals, axis=1))


if __name__ == "__main__":
    # TODO(synk): the base `Aggregation` class is abstract; this implements the
    # canonical SPLADE MaxAggregation (log1p(relu(logits)) masked + max over seq).

    def run_case(B, S, H, V, **kernel_kwargs):
        k = jax.random.fold_in(jax.random.PRNGKey(0), B * 100003 + S * 131 + V)
        kx, kw, kb, km = jax.random.split(k, 4)
        x = jax.random.normal(kx, (B, S, H), dtype=jnp.float32)
        weight = jax.random.normal(kw, (V, H), dtype=jnp.float32) * 0.05  # nn.Linear(H, V).weight
        bias = jax.random.normal(kb, (V,), dtype=jnp.float32) * 0.05
        lens = jax.random.randint(km, (B,), minval=1, maxval=S + 1)
        mask = (jnp.arange(S)[None, :] < lens[:, None]).astype(jnp.float32)

        out = jax.block_until_ready(
            splade_aggregation(x, weight, bias, mask, **kernel_kwargs))
        ref = _reference(x, weight, bias, mask)
        assert out.shape == (B, V)
        assert jnp.allclose(out, ref, atol=1e-4, rtol=1e-4), (
            f"mismatch for B={B} S={S} H={H} V={V}: "
            f"max abs err {jnp.max(jnp.abs(out - ref))}")

    # Small canonical shapes implied by the module (batch, seq, hidden, vocab head).
    run_case(2, 8, 32, 300)
    # Multiple vocab tiles + multiple in-kernel sequence chunks (grid (1, 3),
    # n_chunks = 3), b_tile = B path.
    run_case(3, 40, 64, 640, tile_v=256, tile_s=16, b_tile=8)
    # Multiple batch tiles with padded batch rows (B_pad = 16, grid (2, 1)).
    run_case(10, 24, 32, 384, b_tile=8)

    print("KERNEL_OK")
</pallas_src>

<mosaic_0001>
module attributes {stable_mosaic.version = 11 : i64} {
  func.func @_splade_agg_kernel(%arg0: i32, %arg1: i32, %arg2: memref<2x16x32xbf16, #tpu.memory_space<vmem>>, %arg3: memref<32x384xbf16, #tpu.memory_space<vmem>>, %arg4: memref<1x384xf32, #tpu.memory_space<vmem>>, %arg5: memref<2x16x1xf32, #tpu.memory_space<vmem>>, %arg6: memref<2x384xf32, #tpu.memory_space<vmem>>) attributes {dimension_semantics = [#tpu.dimension_semantics<parallel>, #tpu.dimension_semantics<parallel>], iteration_bounds = array<i64: 1, 1>, scalar_prefetch = 0 : i64, scratch_operands = 0 : i64, tpu.core_type = #tpu.core_type<tc>, window_params = [{transform_indices = @transform_0, window_bounds = array<i64: 2, 16, 32>}, {transform_indices = @transform_1, window_bounds = array<i64: 32, 384>}, {transform_indices = @transform_2, window_bounds = array<i64: 1, 384>}, {transform_indices = @transform_3, window_bounds = array<i64: 2, 16, 1>}, {transform_indices = @transform_4, window_bounds = array<i64: 2, 384>}]} {
    %c0 = arith.constant 0 : index
    %c0_0 = arith.constant 0 : index
    %0 = vector.load %arg4[%c0, %c0_0] : memref<1x384xf32, #tpu.memory_space<vmem>>, vector<1x384xf32>
    %cst = arith.constant 0.000000e+00 : f32
    %1 = vector.broadcast %cst : f32 to vector<2x384xf32>
    %c0_i32 = arith.constant 0 : i32
    %c16_i32 = arith.constant 16 : i32
    %2 = arith.muli %c0_i32, %c16_i32 : i32
    %3 = tpu.assume_multiple %2, 16 : i32
    %c0_1 = arith.constant 0 : index
    %4 = arith.index_cast %3 : i32 to index
    %c0_2 = arith.constant 0 : index
    %5 = vector.load %arg2[%c0_1, %4, %c0_2] : memref<2x16x32xbf16, #tpu.memory_space<vmem>>, vector<2x16x32xbf16>
    %6 = vector.shape_cast %5 : vector<2x16x32xbf16> to vector<32x32xbf16>
    %c0_3 = arith.constant 0 : index
    %c0_4 = arith.constant 0 : index
    %7 = vector.load %arg3[%c0_3, %c0_4] : memref<32x384xbf16, #tpu.memory_space<vmem>>, vector<32x384xbf16>
    %cst_5 = arith.constant dense<0.000000e+00> : vector<32x384xf32>
    %8 = tpu.matmul %6, %7, %cst_5 {dimension_numbers = #tpu.dot_dimension_numbers<[1], [0], [0], [1], [0, 0, 1, 1], [], []>} : vector<32x32xbf16>, vector<32x384xbf16>, vector<32x384xf32> -> vector<32x384xf32>
    %9 = vector.broadcast %0 : vector<1x384xf32> to vector<32x384xf32>
    %10 = arith.addf %8, %9 : vector<32x384xf32>
    %cst_6 = arith.constant 0.000000e+00 : f32
    %11 = vector.broadcast %cst_6 : f32 to vector<32x384xf32>
    %12 = arith.maximumf %10, %11 : vector<32x384xf32>
    %13 = vector.shape_cast %12 : vector<32x384xf32> to vector<2x16x384xf32>
    %c0_7 = arith.constant 0 : index
    %14 = arith.index_cast %3 : i32 to index
    %c0_8 = arith.constant 0 : index
    %15 = vector.load %arg5[%c0_7, %14, %c0_8] : memref<2x16x1xf32, #tpu.memory_space<vmem>>, vector<2x16x1xf32>
    %16 = vector.broadcast %15 : vector<2x16x1xf32> to vector<2x16x384xf32>
    %17 = arith.mulf %13, %16 : vector<2x16x384xf32>
    %cst_9 = arith.constant dense<0xFF800000> : vector<2x384xf32>
    %18 = vector.multi_reduction <maximumf>, %17, %cst_9 [1] : vector<2x16x384xf32> to vector<2x384xf32>
    %19 = arith.maximumf %1, %18 : vector<2x384xf32>
    %c1_i32 = arith.constant 1 : i32
    %20 = math.log1p %19 : vector<2x384xf32>
    %c0_10 = arith.constant 0 : index
    %c0_11 = arith.constant 0 : index
    %21 = vector.load %arg6[%c0_10, %c0_11] : memref<2x384xf32, #tpu.memory_space<vmem>>, vector<2x384xf32>
    tpu.vector_store %arg6[%c0_10, %c0_11], %20 {strides = array<i32>} : memref<2x384xf32, #tpu.memory_space<vmem>>, vector<2x384xf32>,
    return
  }
  func.func @transform_0(%arg0: i32, %arg1: i32) -> (i32, i32, i32) {
    %c0_i32 = arith.constant 0 : i32
    %c0_i32_0 = arith.constant 0 : i32
    %c0_i32_1 = arith.constant 0 : i32
    return %arg0, %c0_i32, %c0_i32_0 : i32, i32, i32
  }
  func.func @transform_1(%arg0: i32, %arg1: i32) -> (i32, i32) {
    %c0_i32 = arith.constant 0 : i32
    %c0_i32_0 = arith.constant 0 : i32
    return %c0_i32, %arg1 : i32, i32
  }
  func.func @transform_2(%arg0: i32, %arg1: i32) -> (i32, i32) {
    %c0_i32 = arith.constant 0 : i32
    %c0_i32_0 = arith.constant 0 : i32
    return %c0_i32, %arg1 : i32, i32
  }
  func.func @transform_3(%arg0: i32, %arg1: i32) -> (i32, i32, i32) {
    %c0_i32 = arith.constant 0 : i32
    %c0_i32_0 = arith.constant 0 : i32
    %c0_i32_1 = arith.constant 0 : i32
    return %arg0, %c0_i32, %c0_i32_0 : i32, i32, i32
  }
  func.func @transform_4(%arg0: i32, %arg1: i32) -> (i32, i32) {
    %c0_i32 = arith.constant 0 : i32
    return %arg0, %arg1 : i32, i32
  }
}

</mosaic_0001>

<bundles_post_ra>
// kernel: splade_aggregation.1
= control target key start
LH: loop header
LB: loop body
LE: loop exit
PB: predicated region body
PF: predicated region fallthrough
CT: control target
= control target key end

     0   :  { %v432_v19 = vmov 0   ;;  %s542_s0 = inlined_call_operand.vmem [shape: bf16[2,16,32], index: 0, kind: input, shape index: {}]   ;;  %s543_s1 = inlined_call_operand.vmem [shape: bf16[32,384], index: 1, kind: input, shape index: {}]   ;;  %s544_s2 = inlined_call_operand.vmem [shape: f32[1,384], index: 2, kind: input, shape index: {}]   ;;  %s545_s3 = inlined_call_operand.vmem [shape: f32[2,16,1], index: 3, kind: input, shape index: {}]   ;;  %s546_s4 = inlined_call_operand.hbm [shape: f32[2,384], index: 4, kind: output, shape index: {}]  }
   0x1   :  { %v364_v0 = vld [vmem:[%s543_s1 + $0x18] sm:$0xf]  ;;  %v386_v1 = vld [vmem:[%s543_s1 + $0x20] sm:$0xf0]  ;;  %v385_v2 = vld [vmem:[%s543_s1 + $0x1c] sm:$0xf]  ;;  %393 = vset.pattern.permute.xlu1 %v432_v19  ;;  %392 = vset.pattern.permute.xlu0 %v432_v19 }
   0x2   :  { %v365_v3 = vor.u32 %v386_v1, %v364_v0  ;;  %v366_v4 = vld [vmem:[%s543_s1 + $0x24] sm:$0xf0]  ;;  %v372_v5 = vld [vmem:[%s543_s1 + $0x20] sm:$0xf]  ;;  %v387_v6 = vld [vmem:[%s543_s1 + $0x28] sm:$0xf0] }
   0x3   :  { %v369_v7 = vor.u32 %v385_v2, %v366_v4  ;;  %v373_v8 = vor.u32 %v387_v6, %v372_v5  ;;  %v352_v9 = vld [vmem:[%s543_s1] sm:$0xf]  ;;  %v383_v10 = vld [vmem:[%s543_s1 + $0x8] sm:$0xf0]  ;;  %v382_v11 = vld [vmem:[%s543_s1 + $0x4] sm:$0xf] }
   0x4   :  { %94 = vmatpush.bf16.msra.mxu0 %v365_v3  ;;  %388 = vmatpush.bf16.msra.mxu3 %v365_v3  ;;  %v353_v12 = vor.u32 %v383_v10, %v352_v9  ;;  %v354_v13 = vld [vmem:[%s543_s1 + $0xc] sm:$0xf0]  ;;  %v360_v14 = vld [vmem:[%s543_s1 + $0x8] sm:$0xf]  ;;  %v384_v15 = vld [vmem:[%s543_s1 + $0x10] sm:$0xf0] }
   0x5   :  { %113 = vmatpush.bf16.msra.mxu1 %v369_v7  ;;  %132 = vmatpush.bf16.msra.mxu2 %v373_v8  ;;  %v357_v16 = vor.u32 %v382_v11, %v354_v13  ;;  %v361_v17 = vor.u32 %v384_v15, %v360_v14  ;;  %v157_v18 = vld [vmem:[%s545_s3] sm:$0xff]  ;;  %v159_v20 = vld [vmem:[%s545_s3 + $0x10] sm:$0xff]  ;;  %v381_v22 = vld [vmem:[%s542_s0 + $0x8] sm:$0xff] }
   0x6   :  { %v380_v21 = vld [vmem:[%s542_s0] sm:$0xff]  ;;  %163 = vperm.xlu1 %393, %v157_v18   ;;  %173 = vperm.xlu0 %392, %v159_v20  }
   0x7   :  { %9 = vsyncpa [#allocation3], 0  ;;  %vm81_vm0 = vcmask 261120   ;;  %v158_v23 = vld [vmem:[%s545_s3 + $0x8] sm:$0xff]  ;;  %v160_v24 = vld [vmem:[%s545_s3 + $0x18] sm:$0xff]  ;;  %vm305_vm7 = vcmask 1041408  }
   0x8   :  { %95 = vmatpush.bf16.msra.mxu0 %v353_v12  ;;  %389 = vmatpush.bf16.msra.mxu3 %v353_v12  ;;  %v19_v25 = vld [vmem:[%s544_s2] sm:$0x7]  ;;  %vm307_vm8 = vcmask 1043456   ;;  %vm316_vm9 = vcmask 1041409   ;;  %vm318_vm10 = vcmask 1043459   ;;  %vm320_vm11 = vcmask 1045509  }
   0x9   :  { %114 = vmatpush.bf16.msra.mxu1 %v357_v16  ;;  %133 = vmatpush.bf16.msra.mxu2 %v361_v17  ;;  %v34_v29 = vperm.slane %v19_v25, 1  ;;  %v33_v33 = vperm.slane %v19_v25, 0  ;;  %v35_v35 = vperm.slane %v19_v25, 2  ;;  %s433_s2 = smov [#allocation2]   ;;  %s333_s27 = sshll.u32 %s546_s4, 4  ;;  %vm322_vm12 = vcmask 1047559   ;;  %s334_s27 = int_to_ptr.hbm [resolvable:$true] %s333_s27 }
   0xa   :  { %s331_s3 = sshll.u32 %s433_s2, 4  ;;  %s332_s3 = int_to_ptr.vmem [resolvable:$true] %s331_s3 }
   0xb   :  { %374 = vmatmul.msk.bf16.vlgmr.msra.gmra.mxu0 %vm81_vm0, %v380_v21  ;;  %375 = vmatmul.msk.bf16.vlgmr.msra.gmra.mxu3 %vm81_vm0, %v381_v22 }
   0xc   :  { %376 = vmatmul.msk.bf16.vlgmr.msra.gmra.mxu1 %vm81_vm0, %v380_v21  ;;  %378 = vmatmul.msk.bf16.vlgmr.msra.gmra.mxu2 %vm81_vm0, %v380_v21 }
   0xe   :  { %168 = vperm.xlu1 %393, %v158_v23   ;;  %178 = vperm.xlu0 %392, %v160_v24  }
  0x1c   :  { %377 = vmatmul.msk.bf16.gmra.mxu1 %vm81_vm0, %v381_v22  ;;  %379 = vmatmul.msk.bf16.gmra.mxu2 %vm81_vm0, %v381_v22 }
  0x78   :  { %v164_v28 = vpop.permute.xlu1 %163  ;;  %v516_v32 = vpop.permute.xlu0 %173 }
  0x80   :  { %v169_v43 = vpop.permute.xlu1 %168  ;;  %v179_v57 = vpop.permute.xlu0 %178 }
  0x88   :  { %v97_v26 = vpop.f32.mrf.mxu0 }
  0x89   :  { %v116_v27 = vpop.f32.mrf.mxu1  ;;  %v98_v41 = vadd.f32 %v97_v26, %v33_v33 }
  0x8a   :  { %v117_v30 = vadd.f32 %v116_v27, %v34_v29 }
  0x8b   :  { %v145_v50 = vmax.f32 %v98_v41, 0.0 }
  0x8c   :  { %v146_v39 = vmax.f32 %v117_v30, 0.0 }
  0x8d   :  { %v181_v62 = vmul.f32 %v164_v28, %v145_v50 }
  0x8e   :  { %v102_v31 = vpop.f32.mrf.mxu3  ;;  %v182_v47 = vmul.f32 %v164_v28, %v146_v39 }
  0x8f   :  { %v135_v34 = vpop.f32.mrf.mxu2  ;;  %v103_v37 = vadd.f32 %v102_v31, %v33_v33 }
  0x90   :  { %v99_v36 = vpop.f32.mrf.mxu0  ;;  %v136_v44 = vadd.f32 %v135_v34, %v35_v35 }
  0x91   :  { %v118_v38 = vpop.f32.mrf.mxu1  ;;  %v100_v42 = vadd.f32 %v99_v36, %v33_v33  ;;  %v151_v46 = vmax.f32 %v103_v37, 0.0 }
  0x92   :  { %v119_v40 = vadd.f32 %v118_v38, %v34_v29  ;;  %v147_v54 = vmax.f32 %v136_v44, 0.0 }
  0x93   :  { %v148_v51 = vmax.f32 %v100_v42, 0.0  ;;  %v187_v58 = vmul.f32 %v516_v32, %v151_v46 }
  0x94   :  { %v149_v45 = vmax.f32 %v119_v40, 0.0  ;;  %v183_v1 = vmul.f32 %v164_v28, %v147_v54 }
  0x95   :  { %v184_v63 = vmul.f32 %v169_v43, %v148_v51 }
  0x96   :  { %v185_v48 = vmul.f32 %v169_v43, %v149_v45  ;;  %v104_v49 = vpop.f32.mrf.mxu3 }
  0x97   :  { %v105_v52 = vadd.f32 %v104_v49, %v33_v33  ;;  %v137_v53 = vpop.f32.mrf.mxu2  ;;  %v193_v6 = vmax.f32 %v181_v62, %v184_v63 }
  0x98   :  { %v200_v55 = vmax.f32 %v182_v47, %v185_v48  ;;  %v138_v56 = vadd.f32 %v137_v53, %v35_v35 }
  0x99   :  { %v154_v59 = vmax.f32 %v105_v52, 0.0  ;;  %v121_v60 = vpop.f32.mrf.mxu1  ;;  %v194_v15 = vrot.slane %v193_v6, 4 }
  0x9a   :  { %v150_v61 = vmax.f32 %v138_v56, 0.0  ;;  %v201_v2 = vrot.slane %v200_v55, 4  ;;  %v122_v10 = vadd.f32 %v121_v60, %v34_v29 }
  0x9b   :  { %v190_v0 = vmul.f32 %v179_v57, %v154_v59  ;;  %v195_v21 = vmax.f32 %v193_v6, %v194_v15 }
  0x9c   :  { %v186_v3 = vmul.f32 %v169_v43, %v150_v61  ;;  %v202_v8 = vmax.f32 %v200_v55, %v201_v2  ;;  %v152_v18 = vmax.f32 %v122_v10, 0.0 }
  0x9d   :  { %v214_v4 = vmax.f32 %v187_v58, %v190_v0  ;;  %v196_v30 = vrot.slane %v195_v21, 2 }
  0x9e   :  { %v207_v5 = vmax.f32 %v183_v1, %v186_v3  ;;  %v203_v16 = vrot.slane %v202_v8, 2  ;;  %v188_v26 = vmul.f32 %v516_v32, %v152_v18 }
  0x9f   :  { %v140_v7 = vpop.f32.mrf.mxu2  ;;  %v215_v11 = vrot.slane %v214_v4, 4  ;;  %v197_v40 = vmax.f32 %v195_v21, %v196_v30 }
  0xa0   :  { %v208_v9 = vrot.slane %v207_v5, 4  ;;  %v204_v23 = vmax.f32 %v202_v8, %v203_v16  ;;  %v141_v24 = vadd.f32 %v140_v7, %v35_v35 }
  0xa1   :  { %v123_v12 = vpop.f32.mrf.mxu1  ;;  %v216_v19 = vmax.f32 %v214_v4, %v215_v11  ;;  %v198_v49 = vrot.slane %v197_v40, 1 }
  0xa2   :  { %v209_v13 = vmax.f32 %v207_v5, %v208_v9  ;;  %v124_v14 = vadd.f32 %v123_v12, %v34_v29  ;;  %v205_v34 = vrot.slane %v204_v23, 1  ;;  %v153_v29 = vmax.f32 %v141_v24, 0.0 }
  0xa3   :  { %v217_v27 = vrot.slane %v216_v19, 2  ;;  %v199_v56 = vmax.f32 %v197_v40, %v198_v49 }
  0xa4   :  { %v155_v17 = vmax.f32 %v124_v14, 0.0  ;;  %v210_v20 = vrot.slane %v209_v13, 2  ;;  %v206_v42 = vmax.f32 %v204_v23, %v205_v34  ;;  %v189_v43 = vmul.f32 %v516_v32, %v153_v29 }
  0xa5   :  { %v218_v36 = vmax.f32 %v216_v19, %v217_v27  ;;  %v235_v63 = vmax.f32 %v199_v56, 0.0 }
  0xa6   :  { %v191_v22 = vmul.f32 %v179_v57, %v155_v17  ;;  %v211_v28 = vmax.f32 %v209_v13, %v210_v20  ;;  %v236_v51 = vmax.f32 %v206_v42, 0.0 }
  0xa7   :  { %v142_v25 = vpop.f32.mrf.mxu2  ;;  %v219_v45 = vrot.slane %v218_v36, 1  ;;  %v241_v5 = vadd.f32 1.0, %v235_v63  ;;  %v244_v13 = vmul.f32 -0.5, %v235_v63 }
  0xa8   :  { %v221_v31 = vmax.f32 %v188_v26, %v191_v22  ;;  %v143_v33 = vadd.f32 %v142_v25, %v35_v35  ;;  %v212_v38 = vrot.slane %v211_v28, 1  ;;  %v250_v59 = vadd.f32 1.0, %v236_v51 }
  0xa9   :  { %v220_v52 = vmax.f32 %v218_v36, %v219_v45  ;;  %v253_v6 = vmul.f32 -0.5, %v236_v51  ;;  %v256_v20 = vand.u32 2147483647, %v236_v51  ;;  %v245_v26 = vadd.f32 1.0, %v244_v13 }
  0xaa   :  { %v222_v37 = vrot.slane %v221_v31, 4  ;;  %v156_v39 = vmax.f32 %v143_v33, 0.0  ;;  %v213_v47 = vmax.f32 %v211_v28, %v212_v38  ;;  %394 = vlog2.f32 %v250_v59 }
  0xab   :  { %v521_v61 = vmax.f32 %v220_v52, 0.0  ;;  %v254_v17 = vadd.f32 1.0, %v253_v6  ;;  %vm531_vm2 = vcmp.lt.f32.partialorder %v256_v20, 0.0004427343  ;;  %v246_v49 = vmul.f32 %v245_v26, %v235_v63 }
  0xac   :  { %v223_v41 = vmax.f32 %v221_v31, %v222_v37  ;;  %v192_v44 = vmul.f32 %v179_v57, %v156_v39  ;;  %v237_v54 = vmax.f32 %v213_v47, 0.0  ;;  %v247_v37 = vand.u32 2147483647, %v235_v63 }
  0xad   :  { %v268_v2 = vadd.f32 1.0, %v521_v61  ;;  %v271_v18 = vmul.f32 -0.5, %v521_v61  ;;  %v255_v31 = vmul.f32 %v254_v17, %v236_v51  ;;  %v274_v40 = vand.u32 2147483647, %v521_v61 }
  0xae   :  { %v224_v46 = vrot.slane %v223_v41, 2  ;;  %v228_v48 = vmax.f32 %v189_v43, %v192_v44  ;;  %v259_v57 = vadd.f32 1.0, %v237_v54  ;;  %v262_v8 = vmul.f32 -0.5, %v237_v54 }
  0xaf   :  { %v265_v23 = vand.u32 2147483647, %v237_v54  ;;  %v272_v33 = vadd.f32 1.0, %v271_v18  ;;  %vm248_vm5 = vcmp.lt.f32.partialorder %v247_v37, 0.0004427343 }
  0xb0   :  { %v225_v50 = vmax.f32 %v223_v41, %v224_v46  ;;  %v229_v35 = vrot.slane %v228_v48, 4  ;;  %v395_v9 = vpop.eup %394  ;;  %v263_v21 = vadd.f32 1.0, %v262_v8  ;;  %vm275_vm6 = vcmp.lt.f32.partialorder %v274_v40, 0.0004427343 }
  0xb1   :  { %v252_v22 = vmul.f32 0.6931472, %v395_v9  ;;  %vm266_vm3 = vcmp.lt.f32.partialorder %v265_v23, 0.0004427343 }
  0xb2   :  { %v226_v53 = vrot.slane %v225_v50, 1  ;;  %v230_v55 = vmax.f32 %v228_v48, %v229_v35  ;;  %v264_v39 = vmul.f32 %v263_v21, %v237_v54 }
  0xb3   :  { %v258_v43 = vsel %vm531_vm2, %v255_v31, %v252_v22 }
  0xb4   :  { %v227_v58 = vmax.f32 %v225_v50, %v226_v53  ;;  %v231_v60 = vrot.slane %v230_v55, 2  ;;  %v273_v50 = vmul.f32 %v272_v33, %v521_v61  ;;  %v301_v35 = vrot.slane %v258_v43, 6 }
  0xb6   :  { %v239_v32 = vmax.f32 %v227_v58, 0.0  ;;  %v232_v62 = vmax.f32 %v230_v55, %v231_v60 }
  0xb8   :  { %v277_v0 = vadd.f32 1.0, %v239_v32  ;;  %v233_v1 = vrot.slane %v232_v62, 1  ;;  %v280_v3 = vmul.f32 -0.5, %v239_v32  ;;  %v283_v14 = vand.u32 2147483647, %v239_v32 }
  0xba   :  { %396 = vlog2.f32 %v277_v0  ;;  %v234_v4 = vmax.f32 %v232_v62, %v233_v1  ;;  %v281_v10 = vadd.f32 1.0, %v280_v3  ;;  %vm525_vm1 = vcmp.lt.f32.partialorder %v283_v14, 0.0004427343 }
  0xbb   :  { %398 = vlog2.f32 %v259_v57 }
  0xbc   :  { %v240_v7 = vmax.f32 %v234_v4, 0.0  ;;  %400 = vlog2.f32 %v268_v2  ;;  %v282_v24 = vmul.f32 %v281_v10, %v239_v32 }
  0xbd   :  { %402 = vlog2.f32 %v241_v5 }
  0xbe   :  { %v286_v11 = vadd.f32 1.0, %v240_v7  ;;  %v289_v15 = vmul.f32 -0.5, %v240_v7  ;;  %v292_v29 = vand.u32 2147483647, %v240_v7 }
  0xc0   :  { %v397_v12 = vpop.eup %396  ;;  %404 = vlog2.f32 %v286_v11  ;;  %v290_v30 = vadd.f32 1.0, %v289_v15  ;;  %vm293_vm4 = vcmp.lt.f32.partialorder %v292_v29, 0.0004427343 }
  0xc1   :  { %v399_v16 = vpop.eup %398  ;;  %v279_v19 = vmul.f32 0.6931472, %v397_v12 }
  0xc2   :  { %v401_v25 = vpop.eup %400  ;;  %v261_v27 = vmul.f32 0.6931472, %v399_v16  ;;  %v291_v44 = vmul.f32 %v290_v30, %v240_v7 }
  0xc3   :  { %v285_v34 = vsel %vm525_vm1, %v282_v24, %v279_v19  ;;  %v403_v36 = vpop.eup %402  ;;  %v270_v42 = vmul.f32 0.6931472, %v401_v25 }
  0xc4   :  { %v267_v45 = vsel %vm266_vm3, %v264_v39, %v261_v27  ;;  %v303_v47 = vrot.slane %v285_v34, 6  ;;  %v243_v48 = vmul.f32 0.6931472, %v403_v36 }
  0xc5   :  { %v276_v52 = vsel %vm275_vm6, %v273_v50, %v270_v42  ;;  %v302_v53 = vrot.slane %v267_v45, 4 }
  0xc6   :  { %v405_v41 = vpop.eup %404  ;;  %v309_v55 = vsel %vm305_vm7, %v276_v52, %v303_v47  ;;  %v249_v56 = vsel %vm248_vm5, %v246_v49, %v243_v48 }
  0xc7   :  { %v288_v46 = vmul.f32 0.6931472, %v405_v41  ;;  %v306_v59 = vsel %vm305_vm7, %v249_v56, %v301_v35 }
  0xc8   :  { %v308_v32 = vsel %vm307_vm8, %v306_v59, %v302_v53 }
  0xc9   :  { %v294_v51 = vsel %vm293_vm4, %v291_v44, %v288_v46 }
  0xca   :  { %v304_v54 = vrot.slane %v294_v51, 4 }
  0xcc   :  { %v310_v58 = vsel %vm307_vm8, %v309_v55, %v304_v54 }
  0xcd   :  { %v315_v60 = vrot.slane %v310_v58, 7 }
  0xcf   :  { %v317_v61 = vsel %vm316_vm9, %v315_v60, %v308_v32 }
  0xd0   :  { %v319_v57 = vsel %vm318_vm10, %v315_v60, %v317_v61 }
  0xd1   :  { %v321_v62 = vsel %vm320_vm11, %v315_v60, %v319_v57 }
  0xd2   :  { %v323_v63 = vsel %vm322_vm12, %v315_v60, %v321_v62 }
  0xd3   :  { %325 = vst [vmem:[#allocation2] sm:$0x3f] %v323_v63 }
  0xd4   :  { %336 = dma.vmem_to_hbm [thread:$0]  %s332_s3, 96, %s334_s27, [#allocation3]  }
  0xd5   :  { %430 = dma.done.wait [#allocation3], 96  }
  0xd6   :  { %431 = vsyncadd [#allocation3], 4294967200 }
  0xd7   :  { %341 = vsyncpa [#allocation3], 1 }

</bundles_post_ra>
